<compile_context>
chip_gen: v5e
topology: v5e:2x2
jax: 0.10.0
libtpu: 0.0.40
codegen_flags: <defaults>
</compile_context>

<pallas_src>
import jax
import jax.numpy as jnp
from jax import lax
from jax.experimental import pallas as pl
from jax.experimental.pallas import tpu as pltpu


# ---------------------------------------------------------------------------
# Fused conv3x3 + BN(eval) + ReLU + 2x2 max-pool kernel (channel-major, lane = pixels)
# ---------------------------------------------------------------------------
def _make_convblock_kernel(Ho, Wo, Cin, Cout):
    Q = Ho * Wo  # pixels per 2x2-parity group (= pooled output pixels)

    def kernel(x_ref, w_ref, scale_ref, shift_ref, o_ref):
        # x_ref:     (1, 4, Cin, Q) bf16  space-to-depth input,
        #            x_ref[0, g, ci, ho*Wo+wo] = x[ci, 2*ho + g//2, 2*wo + g%2]
        # w_ref:     (Cout, 9*Cin)  bf16  raw conv weights, k = (dh*3+dw)*Cin + ci
        # scale_ref: (Cout, 1)      f32   gamma / sqrt(var+eps)
        # shift_ref: (Cout, 1)      f32   beta + (conv_bias - mean) * scale
        # o_ref:     (1, Cout, Q)   f32   pooled output, lane q = ho*Wo + wo
        xg = [x_ref[0, g] for g in range(4)]                      # 4 x (Cin, Q) bf16

        # column index within a pooled row; (1, Q) int32 broadcasts over Cin sublanes
        wo_idx = lax.broadcasted_iota(jnp.int32, (1, Q), 1) % Wo

        def shifted(v, s):
            # result[:, q] = v[:, q + s], zero-filled past both ends (handles the
            # vertical halo automatically since s is a multiple-of-Wo +/- 1 shift).
            if s == 0:
                return v
            if abs(s) >= Q:
                return jnp.zeros_like(v)
            z = jnp.zeros((v.shape[0], abs(s)), v.dtype)
            if s > 0:
                return jnp.concatenate([v[:, s:], z], axis=1)
            return jnp.concatenate([z, v[:, :s]], axis=1)

        pieces = {}

        def piece(gsrc, dho, dwo):
            # (Cin, Q) slab: source group gsrc shifted by (dho, dwo) pooled pixels,
            # zero outside the image.  Only horizontal wraps need an explicit mask.
            key = (gsrc, dho, dwo)
            if key not in pieces:
                v = shifted(xg[gsrc], dho * Wo + dwo)
                if dwo == -1:
                    v = jnp.where(wo_idx >= 1, v, jnp.zeros((), v.dtype))
                elif dwo == 1:
                    v = jnp.where(wo_idx <= Wo - 2, v, jnp.zeros((), v.dtype))
                pieces[key] = v
            return pieces[key]

        # Build the (9*Cin, 4*Q) patch: rows ordered (dh, dw, ci), lanes ordered (g, q).
        rows = []
        for dh in range(3):
            for dw in range(3):
                row = []
                for g in range(4):
                    gh, gw = g >> 1, g & 1
                    sh, sw = gh + dh - 1, gw + dw - 1       # source offsets in full-res h/w
                    gsrc = ((sh & 1) << 1) | (sw & 1)       # source parity group
                    row.append(piece(gsrc, sh >> 1, sw >> 1))
                rows.append(jnp.concatenate(row, axis=1))   # (Cin, 4*Q)
        patch = jnp.concatenate(rows, axis=0)               # (9*Cin, 4*Q)

        # One lane-dense MXU matmul: (Cout, 9*Cin) @ (9*Cin, 4*Q) -> (Cout, 4*Q) f32
        acc = jnp.dot(w_ref[...], patch, preferred_element_type=jnp.float32)

        # BN (f32) + ReLU epilogue
        y = jnp.maximum(acc * scale_ref[...] + shift_ref[...], 0.0)

        # 2x2/2 max-pool = max over the 4 parity groups (contiguous lane slices)
        o_ref[0] = jnp.maximum(jnp.maximum(y[:, 0:Q], y[:, Q:2 * Q]),
                               jnp.maximum(y[:, 2 * Q:3 * Q], y[:, 3 * Q:4 * Q]))

    return kernel


# ---------------------------------------------------------------------------
# Wrapper: NCHW in / NCHW out.  Only wrapper work: space-to-depth permute fused with the
# required f32->bf16 cast (input) and a free reshape (output) -- no HBM transpose passes.
# ---------------------------------------------------------------------------
def conv_block_forward(x_nchw, w_oihw, bias, gamma, beta, run_mean, run_var, eps=1e-5):
    N, Cin, H, W = x_nchw.shape
    Cout = w_oihw.shape[0]
    assert w_oihw.shape == (Cout, Cin, 3, 3)
    assert H % 2 == 0 and W % 2 == 0, "2x2/2 max-pool assumes even H and W"
    Ho, Wo = H // 2, W // 2
    Q = Ho * Wo

    # BatchNorm(eval) affine, applied in the f32 epilogue (weights stay un-scaled).
    scale = (gamma / jnp.sqrt(run_var + eps)).astype(jnp.float32)          # (Cout,)
    shift = (beta + (bias - run_mean) * scale).astype(jnp.float32)         # (Cout,)
    scale = scale.reshape(Cout, 1)
    shift = shift.reshape(Cout, 1)

    # (Cout, Cin, 3, 3) -> (Cout, dh, dw, Cin) -> (Cout, 9*Cin), bf16 for the MXU
    w9 = jnp.transpose(w_oihw, (0, 2, 3, 1)).reshape(Cout, 9 * Cin).astype(jnp.bfloat16)

    # Space-to-depth + bf16 cast (one fused XLA copy):
    # (N, Cin, H, W) -> (N, 4, Cin, Ho*Wo) with group g = 2*(h%2) + (w%2)
    x_g = jnp.transpose(
        x_nchw.reshape(N, Cin, Ho, 2, Wo, 2), (0, 3, 5, 1, 2, 4)
    ).reshape(N, 4, Cin, Q).astype(jnp.bfloat16)

    kernel = _make_convblock_kernel(Ho, Wo, Cin, Cout)
    out = pl.pallas_call(
        kernel,
        out_shape=jax.ShapeDtypeStruct((N, Cout, Q), jnp.float32),
        grid_spec=pltpu.PrefetchScalarGridSpec(
            num_scalar_prefetch=0,
            grid=(N,),
            in_specs=[
                pl.BlockSpec((1, 4, Cin, Q), lambda n: (n, 0, 0, 0)),
                pl.BlockSpec((Cout, 9 * Cin), lambda n: (0, 0)),
                pl.BlockSpec((Cout, 1), lambda n: (0, 0)),
                pl.BlockSpec((Cout, 1), lambda n: (0, 0)),
            ],
            out_specs=pl.BlockSpec((1, Cout, Q), lambda n: (n, 0, 0)),
        ),
        compiler_params=pltpu.CompilerParams(
            dimension_semantics=("parallel",),
            vmem_limit_bytes=64 * 1024 * 1024,
        ),
    )(x_g, w9, scale, shift)

    # (N, Cout, Ho*Wo) -> (N, Cout, Ho, Wo): pure reshape, no transpose.
    return out.reshape(N, Cout, Ho, Wo)


# ---------------------------------------------------------------------------
# Pure-JAX f32 reference (eval-mode ConvBlock) for a correctness check
# ---------------------------------------------------------------------------
def conv_block_reference(x, w, bias, gamma, beta, run_mean, run_var, eps=1e-5):
    y = lax.conv_general_dilated(x, w, window_strides=(1, 1),
                                 padding=((1, 1), (1, 1)),
                                 dimension_numbers=("NCHW", "OIHW", "NCHW"))
    y = y + bias[None, :, None, None]
    inv = 1.0 / jnp.sqrt(run_var + eps)
    y = (y - run_mean[None, :, None, None]) * (gamma * inv)[None, :, None, None] \
        + beta[None, :, None, None]
    y = jnp.maximum(y, 0.0)
    n, c, h, w_ = y.shape
    return y.reshape(n, c, h // 2, 2, w_ // 2, 2).max(axis=(3, 5))


# ---------------------------------------------------------------------------
if __name__ == "__main__":
    key = jax.random.PRNGKey(0)
    kx, kw, kb, kg, kbt, km, kv = jax.random.split(key, 7)

    N, Cin, Cout, H, W = 2, 4, 8, 16, 16
    x = jax.random.normal(kx, (N, Cin, H, W), jnp.float32)
    w = jax.random.normal(kw, (Cout, Cin, 3, 3), jnp.float32) / (9.0 * Cin) ** 0.5
    bias = 0.05 * jax.random.normal(kb, (Cout,), jnp.float32)
    gamma = 1.0 + 0.1 * jax.random.normal(kg, (Cout,), jnp.float32)
    beta = 0.1 * jax.random.normal(kbt, (Cout,), jnp.float32)
    run_mean = 0.05 * jax.random.normal(km, (Cout,), jnp.float32)
    run_var = jax.random.uniform(kv, (Cout,), jnp.float32, 0.5, 1.5)

    out = jax.jit(conv_block_forward)(x, w, bias, gamma, beta, run_mean, run_var)
    out = jax.block_until_ready(out)

    ref = conv_block_reference(x, w, bias, gamma, beta, run_mean, run_var)
    assert out.shape == (N, Cout, H // 2, W // 2) and out.dtype == jnp.float32
    assert bool(jnp.allclose(out, ref, atol=5e-2, rtol=5e-2)), \
        f"mismatch vs reference: max_err={float(jnp.max(jnp.abs(out - ref)))}"
    print("KERNEL_OK")
</pallas_src>

<mosaic_0001>
module attributes {stable_mosaic.version = 11 : i64} {
  func.func @kernel(%arg0: i32, %arg1: memref<1x4x4x64xbf16, #tpu.memory_space<vmem>>, %arg2: memref<8x36xbf16, #tpu.memory_space<vmem>>, %arg3: memref<8x1xf32, #tpu.memory_space<vmem>>, %arg4: memref<8x1xf32, #tpu.memory_space<vmem>>, %arg5: memref<1x8x64xf32, #tpu.memory_space<vmem>>) attributes {dimension_semantics = [#tpu.dimension_semantics<parallel>], iteration_bounds = array<i64: 2>, scalar_prefetch = 0 : i64, scratch_operands = 0 : i64, tpu.core_type = #tpu.core_type<tc>, window_params = [{transform_indices = @transform_0, window_bounds = array<i64: 1, 4, 4, 64>}, {pipeline_mode = #tpu.pipeline_mode<synchronous>, transform_indices = @transform_1, window_bounds = array<i64: 8, 36>}, {pipeline_mode = #tpu.pipeline_mode<synchronous>, transform_indices = @transform_2, window_bounds = array<i64: 8, 1>}, {pipeline_mode = #tpu.pipeline_mode<synchronous>, transform_indices = @transform_3, window_bounds = array<i64: 8, 1>}, {transform_indices = @transform_4, window_bounds = array<i64: 1, 8, 64>}]} {
    %c0 = arith.constant 0 : index
    %c0_0 = arith.constant 0 : index
    %c0_1 = arith.constant 0 : index
    %c0_2 = arith.constant 0 : index
    %0 = vector.load %arg1[%c0, %c0_0, %c0_1, %c0_2] : memref<1x4x4x64xbf16, #tpu.memory_space<vmem>>, vector<1x1x4x64xbf16>
    %1 = vector.shape_cast %0 : vector<1x1x4x64xbf16> to vector<4x64xbf16>
    %c0_3 = arith.constant 0 : index
    %c1 = arith.constant 1 : index
    %c0_4 = arith.constant 0 : index
    %c0_5 = arith.constant 0 : index
    %2 = vector.load %arg1[%c0_3, %c1, %c0_4, %c0_5] : memref<1x4x4x64xbf16, #tpu.memory_space<vmem>>, vector<1x1x4x64xbf16>
    %3 = vector.shape_cast %2 : vector<1x1x4x64xbf16> to vector<4x64xbf16>
    %c0_6 = arith.constant 0 : index
    %c2 = arith.constant 2 : index
    %c0_7 = arith.constant 0 : index
    %c0_8 = arith.constant 0 : index
    %4 = vector.load %arg1[%c0_6, %c2, %c0_7, %c0_8] : memref<1x4x4x64xbf16, #tpu.memory_space<vmem>>, vector<1x1x4x64xbf16>
    %5 = vector.shape_cast %4 : vector<1x1x4x64xbf16> to vector<4x64xbf16>
    %c0_9 = arith.constant 0 : index
    %c3 = arith.constant 3 : index
    %c0_10 = arith.constant 0 : index
    %c0_11 = arith.constant 0 : index
    %6 = vector.load %arg1[%c0_9, %c3, %c0_10, %c0_11] : memref<1x4x4x64xbf16, #tpu.memory_space<vmem>>, vector<1x1x4x64xbf16>
    %7 = vector.shape_cast %6 : vector<1x1x4x64xbf16> to vector<4x64xbf16>
    %8 = tpu.iota {dimensions = array<i32: 1>} : vector<1x64xi32>
    %c8_i32 = arith.constant 8 : i32
    %c0_i32 = arith.constant 0 : i32
    %9 = arith.cmpi eq, %c8_i32, %c0_i32 : i32
    %c1_i32 = arith.constant 1 : i32
    %10 = arith.select %9, %c1_i32, %c8_i32 : i32
    %11 = vector.broadcast %10 : i32 to vector<1x64xi32>
    %12 = arith.remsi %8, %11 : vector<1x64xi32>
    %c0_i32_12 = arith.constant 0 : i32
    %13 = vector.broadcast %c0_i32_12 : i32 to vector<1x64xi32>
    %14 = arith.cmpi ne, %12, %13 : vector<1x64xi32>
    %c0_i32_13 = arith.constant 0 : i32
    %15 = vector.broadcast %c0_i32_13 : i32 to vector<1x64xi32>
    %16 = arith.cmpi slt, %12, %15 : vector<1x64xi32>
    %c0_i32_14 = arith.constant 0 : i32
    %17 = arith.cmpi slt, %10, %c0_i32_14 : i32
    %18 = vector.broadcast %17 : i1 to vector<1x64xi1>
    %19 = vector.broadcast %18 : vector<1x64xi1> to vector<1x64xi1>
    %20 = arith.xori %16, %19 : vector<1x64xi1>
    %21 = arith.andi %20, %14 : vector<1x64xi1>
    %22 = vector.broadcast %10 : i32 to vector<1x64xi32>
    %23 = arith.addi %12, %22 : vector<1x64xi32>
    %24 = arith.select %21, %23, %12 : vector<1x64xi1>, vector<1x64xi32>
    %cst = arith.constant 0.000000e+00 : bf16
    %25 = vector.broadcast %cst : bf16 to vector<4x9xbf16>
    %26 = vector.extract_strided_slice %7 {offsets = [0, 0], sizes = [4, 55], strides = [1, 1]} : vector<4x64xbf16> to vector<4x55xbf16>
    %27 = tpu.concatenate %25, %26 in 1 : vector<4x9xbf16>, vector<4x55xbf16> -> vector<4x64xbf16>
    %c1_i32_15 = arith.constant 1 : i32
    %28 = vector.broadcast %c1_i32_15 : i32 to vector<1x64xi32>
    %29 = arith.cmpi sge, %24, %28 : vector<1x64xi32>
    %cst_16 = arith.constant 0.000000e+00 : bf16
    %30 = vector.shape_cast %29 : vector<1x64xi1> to vector<1x64xi1>
    %31 = vector.broadcast %30 : vector<1x64xi1> to vector<4x64xi1>
    %32 = vector.broadcast %cst_16 : bf16 to vector<4x64xbf16>
    %33 = arith.select %31, %27, %32 : vector<4x64xi1>, vector<4x64xbf16>
    %cst_17 = arith.constant 0.000000e+00 : bf16
    %34 = vector.broadcast %cst_17 : bf16 to vector<4x8xbf16>
    %35 = vector.extract_strided_slice %5 {offsets = [0, 0], sizes = [4, 56], strides = [1, 1]} : vector<4x64xbf16> to vector<4x56xbf16>
    %36 = tpu.concatenate %34, %35 in 1 : vector<4x8xbf16>, vector<4x56xbf16> -> vector<4x64xbf16>
    %cst_18 = arith.constant 0.000000e+00 : bf16
    %37 = vector.broadcast %cst_18 : bf16 to vector<4x1xbf16>
    %38 = vector.extract_strided_slice %3 {offsets = [0, 0], sizes = [4, 63], strides = [1, 1]} : vector<4x64xbf16> to vector<4x63xbf16>
    %39 = tpu.concatenate %37, %38 in 1 : vector<4x1xbf16>, vector<4x63xbf16> -> vector<4x64xbf16>
    %c1_i32_19 = arith.constant 1 : i32
    %40 = vector.broadcast %c1_i32_19 : i32 to vector<1x64xi32>
    %41 = arith.cmpi sge, %24, %40 : vector<1x64xi32>
    %cst_20 = arith.constant 0.000000e+00 : bf16
    %42 = vector.shape_cast %41 : vector<1x64xi1> to vector<1x64xi1>
    %43 = vector.broadcast %42 : vector<1x64xi1> to vector<4x64xi1>
    %44 = vector.broadcast %cst_20 : bf16 to vector<4x64xbf16>
    %45 = arith.select %43, %39, %44 : vector<4x64xi1>, vector<4x64xbf16>
    %46 = tpu.concatenate %33, %36, %45, %1 in 1 : vector<4x64xbf16>, vector<4x64xbf16>, vector<4x64xbf16>, vector<4x64xbf16> -> vector<4x256xbf16>
    %cst_21 = arith.constant 0.000000e+00 : bf16
    %47 = vector.broadcast %cst_21 : bf16 to vector<4x8xbf16>
    %48 = vector.extract_strided_slice %7 {offsets = [0, 0], sizes = [4, 56], strides = [1, 1]} : vector<4x64xbf16> to vector<4x56xbf16>
    %49 = tpu.concatenate %47, %48 in 1 : vector<4x8xbf16>, vector<4x56xbf16> -> vector<4x64xbf16>
    %50 = tpu.concatenate %36, %49, %1, %3 in 1 : vector<4x64xbf16>, vector<4x64xbf16>, vector<4x64xbf16>, vector<4x64xbf16> -> vector<4x256xbf16>
    %cst_22 = arith.constant 0.000000e+00 : bf16
    %51 = vector.broadcast %cst_22 : bf16 to vector<4x7xbf16>
    %52 = vector.extract_strided_slice %5 {offsets = [0, 0], sizes = [4, 57], strides = [1, 1]} : vector<4x64xbf16> to vector<4x57xbf16>
    %53 = tpu.concatenate %51, %52 in 1 : vector<4x7xbf16>, vector<4x57xbf16> -> vector<4x64xbf16>
    %c6_i32 = arith.constant 6 : i32
    %54 = vector.broadcast %c6_i32 : i32 to vector<1x64xi32>
    %55 = arith.cmpi sle, %24, %54 : vector<1x64xi32>
    %cst_23 = arith.constant 0.000000e+00 : bf16
    %56 = vector.shape_cast %55 : vector<1x64xi1> to vector<1x64xi1>
    %57 = vector.broadcast %56 : vector<1x64xi1> to vector<4x64xi1>
    %58 = vector.broadcast %cst_23 : bf16 to vector<4x64xbf16>
    %59 = arith.select %57, %53, %58 : vector<4x64xi1>, vector<4x64xbf16>
    %cst_24 = arith.constant 0.000000e+00 : bf16
    %60 = vector.broadcast %cst_24 : bf16 to vector<4x1xbf16>
    %61 = vector.extract_strided_slice %1 {offsets = [0, 1], sizes = [4, 63], strides = [1, 1]} : vector<4x64xbf16> to vector<4x63xbf16>
    %62 = tpu.concatenate %61, %60 in 1 : vector<4x63xbf16>, vector<4x1xbf16> -> vector<4x64xbf16>
    %c6_i32_25 = arith.constant 6 : i32
    %63 = vector.broadcast %c6_i32_25 : i32 to vector<1x64xi32>
    %64 = arith.cmpi sle, %24, %63 : vector<1x64xi32>
    %cst_26 = arith.constant 0.000000e+00 : bf16
    %65 = vector.shape_cast %64 : vector<1x64xi1> to vector<1x64xi1>
    %66 = vector.broadcast %65 : vector<1x64xi1> to vector<4x64xi1>
    %67 = vector.broadcast %cst_26 : bf16 to vector<4x64xbf16>
    %68 = arith.select %66, %62, %67 : vector<4x64xi1>, vector<4x64xbf16>
    %69 = tpu.concatenate %49, %59, %3, %68 in 1 : vector<4x64xbf16>, vector<4x64xbf16>, vector<4x64xbf16>, vector<4x64xbf16> -> vector<4x256xbf16>
    %cst_27 = arith.constant 0.000000e+00 : bf16
    %70 = vector.broadcast %cst_27 : bf16 to vector<4x1xbf16>
    %71 = vector.extract_strided_slice %7 {offsets = [0, 0], sizes = [4, 63], strides = [1, 1]} : vector<4x64xbf16> to vector<4x63xbf16>
    %72 = tpu.concatenate %70, %71 in 1 : vector<4x1xbf16>, vector<4x63xbf16> -> vector<4x64xbf16>
    %c1_i32_28 = arith.constant 1 : i32
    %73 = vector.broadcast %c1_i32_28 : i32 to vector<1x64xi32>
    %74 = arith.cmpi sge, %24, %73 : vector<1x64xi32>
    %cst_29 = arith.constant 0.000000e+00 : bf16
    %75 = vector.shape_cast %74 : vector<1x64xi1> to vector<1x64xi1>
    %76 = vector.broadcast %75 : vector<1x64xi1> to vector<4x64xi1>
    %77 = vector.broadcast %cst_29 : bf16 to vector<4x64xbf16>
    %78 = arith.select %76, %72, %77 : vector<4x64xi1>, vector<4x64xbf16>
    %79 = tpu.concatenate %45, %1, %78, %5 in 1 : vector<4x64xbf16>, vector<4x64xbf16>, vector<4x64xbf16>, vector<4x64xbf16> -> vector<4x256xbf16>
    %80 = tpu.concatenate %1, %3, %5, %7 in 1 : vector<4x64xbf16>, vector<4x64xbf16>, vector<4x64xbf16>, vector<4x64xbf16> -> vector<4x256xbf16>
    %cst_30 = arith.constant 0.000000e+00 : bf16
    %81 = vector.broadcast %cst_30 : bf16 to vector<4x1xbf16>
    %82 = vector.extract_strided_slice %5 {offsets = [0, 1], sizes = [4, 63], strides = [1, 1]} : vector<4x64xbf16> to vector<4x63xbf16>
    %83 = tpu.concatenate %82, %81 in 1 : vector<4x63xbf16>, vector<4x1xbf16> -> vector<4x64xbf16>
    %c6_i32_31 = arith.constant 6 : i32
    %84 = vector.broadcast %c6_i32_31 : i32 to vector<1x64xi32>
    %85 = arith.cmpi sle, %24, %84 : vector<1x64xi32>
    %cst_32 = arith.constant 0.000000e+00 : bf16
    %86 = vector.shape_cast %85 : vector<1x64xi1> to vector<1x64xi1>
    %87 = vector.broadcast %86 : vector<1x64xi1> to vector<4x64xi1>
    %88 = vector.broadcast %cst_32 : bf16 to vector<4x64xbf16>
    %89 = arith.select %87, %83, %88 : vector<4x64xi1>, vector<4x64xbf16>
    %90 = tpu.concatenate %3, %68, %7, %89 in 1 : vector<4x64xbf16>, vector<4x64xbf16>, vector<4x64xbf16>, vector<4x64xbf16> -> vector<4x256xbf16>
    %cst_33 = arith.constant 0.000000e+00 : bf16
    %91 = vector.broadcast %cst_33 : bf16 to vector<4x7xbf16>
    %92 = vector.extract_strided_slice %3 {offsets = [0, 7], sizes = [4, 57], strides = [1, 1]} : vector<4x64xbf16> to vector<4x57xbf16>
    %93 = tpu.concatenate %92, %91 in 1 : vector<4x57xbf16>, vector<4x7xbf16> -> vector<4x64xbf16>
    %c1_i32_34 = arith.constant 1 : i32
    %94 = vector.broadcast %c1_i32_34 : i32 to vector<1x64xi32>
    %95 = arith.cmpi sge, %24, %94 : vector<1x64xi32>
    %cst_35 = arith.constant 0.000000e+00 : bf16
    %96 = vector.shape_cast %95 : vector<1x64xi1> to vector<1x64xi1>
    %97 = vector.broadcast %96 : vector<1x64xi1> to vector<4x64xi1>
    %98 = vector.broadcast %cst_35 : bf16 to vector<4x64xbf16>
    %99 = arith.select %97, %93, %98 : vector<4x64xi1>, vector<4x64xbf16>
    %cst_36 = arith.constant 0.000000e+00 : bf16
    %100 = vector.broadcast %cst_36 : bf16 to vector<4x8xbf16>
    %101 = vector.extract_strided_slice %1 {offsets = [0, 8], sizes = [4, 56], strides = [1, 1]} : vector<4x64xbf16> to vector<4x56xbf16>
    %102 = tpu.concatenate %101, %100 in 1 : vector<4x56xbf16>, vector<4x8xbf16> -> vector<4x64xbf16>
    %103 = tpu.concatenate %78, %5, %99, %102 in 1 : vector<4x64xbf16>, vector<4x64xbf16>, vector<4x64xbf16>, vector<4x64xbf16> -> vector<4x256xbf16>
    %cst_37 = arith.constant 0.000000e+00 : bf16
    %104 = vector.broadcast %cst_37 : bf16 to vector<4x8xbf16>
    %105 = vector.extract_strided_slice %3 {offsets = [0, 8], sizes = [4, 56], strides = [1, 1]} : vector<4x64xbf16> to vector<4x56xbf16>
    %106 = tpu.concatenate %105, %104 in 1 : vector<4x56xbf16>, vector<4x8xbf16> -> vector<4x64xbf16>
    %107 = tpu.concatenate %5, %7, %102, %106 in 1 : vector<4x64xbf16>, vector<4x64xbf16>, vector<4x64xbf16>, vector<4x64xbf16> -> vector<4x256xbf16>
    %cst_38 = arith.constant 0.000000e+00 : bf16
    %108 = vector.broadcast %cst_38 : bf16 to vector<4x9xbf16>
    %109 = vector.extract_strided_slice %1 {offsets = [0, 9], sizes = [4, 55], strides = [1, 1]} : vector<4x64xbf16> to vector<4x55xbf16>
    %110 = tpu.concatenate %109, %108 in 1 : vector<4x55xbf16>, vector<4x9xbf16> -> vector<4x64xbf16>
    %c6_i32_39 = arith.constant 6 : i32
    %111 = vector.broadcast %c6_i32_39 : i32 to vector<1x64xi32>
    %112 = arith.cmpi sle, %24, %111 : vector<1x64xi32>
    %cst_40 = arith.constant 0.000000e+00 : bf16
    %113 = vector.shape_cast %112 : vector<1x64xi1> to vector<1x64xi1>
    %114 = vector.broadcast %113 : vector<1x64xi1> to vector<4x64xi1>
    %115 = vector.broadcast %cst_40 : bf16 to vector<4x64xbf16>
    %116 = arith.select %114, %110, %115 : vector<4x64xi1>, vector<4x64xbf16>
    %117 = tpu.concatenate %7, %89, %106, %116 in 1 : vector<4x64xbf16>, vector<4x64xbf16>, vector<4x64xbf16>, vector<4x64xbf16> -> vector<4x256xbf16>
    %118 = tpu.concatenate %46, %50, %69, %79, %80, %90, %103, %107, %117 in 0 : vector<4x256xbf16>, vector<4x256xbf16>, vector<4x256xbf16>, vector<4x256xbf16>, vector<4x256xbf16>, vector<4x256xbf16>, vector<4x256xbf16>, vector<4x256xbf16>, vector<4x256xbf16> -> vector<36x256xbf16>
    %c0_41 = arith.constant 0 : index
    %c0_42 = arith.constant 0 : index
    %119 = vector.load %arg2[%c0_41, %c0_42] : memref<8x36xbf16, #tpu.memory_space<vmem>>, vector<8x36xbf16>
    %cst_43 = arith.constant dense<0.000000e+00> : vector<8x256xf32>
    %120 = tpu.matmul %119, %118, %cst_43 {dimension_numbers = #tpu.dot_dimension_numbers<[1], [0], [0], [1], [0, 0, 1, 1], [], []>} : vector<8x36xbf16>, vector<36x256xbf16>, vector<8x256xf32> -> vector<8x256xf32>
    %c0_44 = arith.constant 0 : index
    %c0_45 = arith.constant 0 : index
    %121 = vector.load %arg3[%c0_44, %c0_45] : memref<8x1xf32, #tpu.memory_space<vmem>>, vector<8x1xf32>
    %122 = vector.broadcast %121 : vector<8x1xf32> to vector<8x256xf32>
    %123 = arith.mulf %120, %122 : vector<8x256xf32>
    %c0_46 = arith.constant 0 : index
    %c0_47 = arith.constant 0 : index
    %124 = vector.load %arg4[%c0_46, %c0_47] : memref<8x1xf32, #tpu.memory_space<vmem>>, vector<8x1xf32>
    %125 = vector.broadcast %124 : vector<8x1xf32> to vector<8x256xf32>
    %126 = arith.addf %123, %125 : vector<8x256xf32>
    %cst_48 = arith.constant 0.000000e+00 : f32
    %127 = vector.broadcast %cst_48 : f32 to vector<8x256xf32>
    %128 = arith.maximumf %126, %127 : vector<8x256xf32>
    %129 = vector.extract_strided_slice %128 {offsets = [0, 0], sizes = [8, 64], strides = [1, 1]} : vector<8x256xf32> to vector<8x64xf32>
    %130 = vector.extract_strided_slice %128 {offsets = [0, 64], sizes = [8, 64], strides = [1, 1]} : vector<8x256xf32> to vector<8x64xf32>
    %131 = arith.maximumf %129, %130 : vector<8x64xf32>
    %132 = vector.extract_strided_slice %128 {offsets = [0, 128], sizes = [8, 64], strides = [1, 1]} : vector<8x256xf32> to vector<8x64xf32>
    %133 = vector.extract_strided_slice %128 {offsets = [0, 192], sizes = [8, 64], strides = [1, 1]} : vector<8x256xf32> to vector<8x64xf32>
    %134 = arith.maximumf %132, %133 : vector<8x64xf32>
    %135 = arith.maximumf %131, %134 : vector<8x64xf32>
    %c0_49 = arith.constant 0 : index
    %c0_50 = arith.constant 0 : index
    %c0_51 = arith.constant 0 : index
    %136 = vector.load %arg5[%c0_49, %c0_50, %c0_51] : memref<1x8x64xf32, #tpu.memory_space<vmem>>, vector<1x8x64xf32>
    %137 = vector.shape_cast %136 : vector<1x8x64xf32> to vector<8x64xf32>
    %138 = vector.shape_cast %135 : vector<8x64xf32> to vector<1x8x64xf32>
    tpu.vector_store %arg5[%c0_49, %c0_50, %c0_51], %138 {strides = array<i32>} : memref<1x8x64xf32, #tpu.memory_space<vmem>>, vector<1x8x64xf32>,
    return
  }
  func.func @transform_0(%arg0: i32) -> (i32, i32, i32, i32) {
    %c0_i32 = arith.constant 0 : i32
    %c0_i32_0 = arith.constant 0 : i32
    %c0_i32_1 = arith.constant 0 : i32
    %c0_i32_2 = arith.constant 0 : i32
    return %arg0, %c0_i32, %c0_i32_0, %c0_i32_1 : i32, i32, i32, i32
  }
  func.func @transform_1(%arg0: i32) -> (i32, i32) {
    %c0_i32 = arith.constant 0 : i32
    %c0_i32_0 = arith.constant 0 : i32
    %c0_i32_1 = arith.constant 0 : i32
    return %c0_i32, %c0_i32_0 : i32, i32
  }
  func.func @transform_2(%arg0: i32) -> (i32, i32) {
    %c0_i32 = arith.constant 0 : i32
    %c0_i32_0 = arith.constant 0 : i32
    %c0_i32_1 = arith.constant 0 : i32
    return %c0_i32, %c0_i32_0 : i32, i32
  }
  func.func @transform_3(%arg0: i32) -> (i32, i32) {
    %c0_i32 = arith.constant 0 : i32
    %c0_i32_0 = arith.constant 0 : i32
    %c0_i32_1 = arith.constant 0 : i32
    return %c0_i32, %c0_i32_0 : i32, i32
  }
  func.func @transform_4(%arg0: i32) -> (i32, i32, i32) {
    %c0_i32 = arith.constant 0 : i32
    %c0_i32_0 = arith.constant 0 : i32
    %c0_i32_1 = arith.constant 0 : i32
    return %arg0, %c0_i32, %c0_i32_0 : i32, i32, i32
  }
}

</mosaic_0001>

<bundles_post_ra>
// kernel: conv_block_forward.1
= control target key start
LH: loop header
LB: loop body
LE: loop exit
PB: predicated region body
PF: predicated region fallthrough
CT: control target
= control target key end

     0   :  { %s692_s15 = smov 0   ;;  %s873_s0 = inlined_call_operand.vmem [shape: bf16[2,4,4,64], index: 0, kind: input, shape index: {}]   ;;  %s874_s1 = inlined_call_operand.vmem [shape: bf16[8,36], index: 1, kind: input, shape index: {}]   ;;  %s875_s2 = inlined_call_operand.vmem [shape: f32[8,1], index: 2, kind: input, shape index: {}]   ;;  %s876_s3 = inlined_call_operand.vmem [shape: f32[8,1], index: 3, kind: input, shape index: {}]   ;;  %s877_s4 = inlined_call_operand.vmem [shape: f32[2,8,64], index: 4, kind: output, shape index: {}]  }
   0x1 LB: > { %s612_s16 = sadd.s32 4294967295, %s655_s15   ;;  %p616_p0 = scmp.ge.s32.totalorder %s655_s15, 1  ;;  %s655_s15 = sphi %s692_s15, %s14_s15  }
   0x2   : > { %p162_p1 = scmp.lt.s32.totalorder %s655_s15, 3 }
   0x4   : > { %p163_p2 = pnand %p616_p0, %p162_p1 }
   0x5   : > { %p187_p3 = scmp.lt.s32.totalorder (!%p163_p2), %s612_s16, 1  ;;  %s657_s21 = smov (!%p163_p2), 8  }
   0x6   : > { %166 = sbr.rel (%p163_p2) target bundleno = 674 (0x2a2), region = 36  ;;  %s658_s22 = smov (!%p163_p2), 7  }
   0x7   : > { %s659_s23 = smov (!%p163_p2), 127   ;;  %s660_s24 = smov (!%p163_p2), 1  }
   0x8   : > { %s661_s25 = smov (!%p163_p2), 121   ;;  %s662_s26 = smov (!%p163_p2), 120  }
   0x9   : > { %s663_s27 = smov (!%p163_p2), 64   ;;  %s664_s28 = smov (!%p163_p2), 119  }
   0xa   : > { %s665_s29 = smov (!%p163_p2), 9  }
   0xb   : > { %s883_s16 = smov (!%p187_p3, %s612_s16), 1  ;;  %vm240_vm0 = vcmask 64512   ;;  %v204_v27 = vlaneseq  ;;  %vm294_vm2 = vcmask 56320   ;;  %vm308_vm4 = vcmask 515072  }
   0xc   : > { %s627_s17 = sshll.u32 %s883_s16, 3  ;;  %vm390_vm5 = vcmask 457728   ;;  %vm430_vm6 = vcmask 449536   ;;  %vm249_vm8 = vcmask 7168   ;;  %vm263_vm10 = vcmask 523264  }
   0xd   : > { %s191_s20 = scalar_lea.vmem %s873_s0, %s627_s17  ;;  %v205_v28 = vand.u32 127, %v204_v27  ;;  %vm463_vm11 = vcmask 1041408   ;;  %vm468_vm12 = vcmask 1043456   ;;  %vm473_vm13 = vcmask 1045504   ;;  %s195_s12 = scalar_lea.vmem %s877_s4, %s627_s17 }
   0xe   : > { %v708_v0 = vld [vmem:[%s191_s20 + $0x6] sm:$0x3]  ;;  %v711_v1 = vld [vmem:[%s191_s20 + $0x4] sm:$0x3]  ;;  %v716_v3 = vld [vmem:[%s191_s20 + $0x2] sm:$0x3] }
   0xf   : > { %219 = vst [vmem:[#allocation1] ss:$4 sm:$0xff] %v708_v0  ;;  %v719_v5 = vld [vmem:[%s191_s20] sm:$0x3]  ;;  %v210_v30 = vand.u32 7, %v205_v28  ;;  %vm380_vm14 = vcmask 465920  }
  0x10   : > { %vm224_vm15 = vcmask 72704  }
  0x11   : > { %vm298_vm1 = vcmp.le.s32.totalorder %v210_v30, 6  ;;  %vm229_vm7 = vcmp.ge.s32.totalorder %v210_v30, 1 }
  0x12   : > { %vm759_vm3 = vmpackc.low %vm298_vm1, %vm298_vm1 }
  0x13   : > { %vm793_vm9 = vmpackc.low %vm229_vm7, %vm229_vm7 }
  0x16   : > { %v713_v2 = vld.sshfl [vmem:[#allocation1] sm:$0xff pattern:$0x73625140] }
  0x17   : > { %235 = vst [vmem:[#allocation1] ss:$4 sm:$0xff] %v711_v1 }
  0x1e   : > { %v236_v4 = vld.sshfl [vmem:[#allocation1] sm:$0xff pattern:$0x73625140] }
  0x1f   : > { %244 = vst [vmem:[#allocation1] ss:$4 sm:$0xff] %v716_v3  ;;  %238 = vrot.lane.b32.xlu1 %v236_v4, %s657_s21 }
  0x26   : > { %v245_v6 = vld.sshfl [vmem:[#allocation1] sm:$0xff pattern:$0x73625140] }
  0x27   : > { %258 = vst [vmem:[#allocation1] ss:$4 sm:$0xff] %v719_v5 }
  0x2e   : > { %v722_v7 = vld.sshfl [vmem:[#allocation1] sm:$0xff pattern:$0x73625140] }
  0x2f   : > { %270 = vst [vmem:[#allocation1] ss:$4 sm:$0xff] %v708_v0 }
  0x36   : > { %v271_v8 = vld.sshfl [vmem:[#allocation1] sm:$0xff pattern:$0x73625140] }
  0x37   : > { %273 = vrot.lane.b32.xlu2 %v271_v8, %s657_s21  ;;  %280 = vst [vmem:[#allocation1] ss:$4 sm:$0xff] %v716_v3 }
  0x3e   : > { %v726_v9 = vld.sshfl [vmem:[#allocation1] sm:$0xff pattern:$0x73625140] }
  0x3f   : > { %289 = vst [vmem:[#allocation1] ss:$4 sm:$0xff] %v711_v1 }
  0x46   : > { %v290_v10 = vld.sshfl [vmem:[#allocation1] sm:$0xff pattern:$0x73625140] }
  0x47   : > { %292 = vrot.lane.b32.xlu0 %v290_v10, %s658_s22  ;;  %303 = vst [vmem:[#allocation1] ss:$4 sm:$0xff] %v719_v5 }
  0x4e   : > { %v304_v11 = vld.sshfl [vmem:[#allocation1] sm:$0xff pattern:$0x73625140] }
  0x4f   : > { %306 = vrot.lane.b32.xlu0 %v304_v11, %s659_s23  ;;  %323 = vst [vmem:[#allocation1] ss:$4 sm:$0xff] %v708_v0  ;;  %v529_v11 = vld [vmem:[%s875_s2] sm:$0xff] }
  0x56   : > { %v324_v12 = vld.sshfl [vmem:[#allocation1] sm:$0xff pattern:$0x73625140] }
  0x57   : > { %332 = vst [vmem:[#allocation1] ss:$4 sm:$0xff] %v719_v5  ;;  %326 = vrot.lane.b32.xlu2 %v324_v12, %s660_s24  ;;  %v537_v12 = vld [vmem:[%s876_s3] sm:$0xff] }
  0x5e   : > { %v733_v13 = vld.sshfl [vmem:[#allocation1] sm:$0xff pattern:$0x73625140] }
  0x5f   : > { %337 = vst [vmem:[#allocation1] ss:$4 sm:$0xff] %v711_v1 }
  0x66   : > { %v736_v14 = vld.sshfl [vmem:[#allocation1] sm:$0xff pattern:$0x73625140] }
  0x67   : > { %347 = vst [vmem:[#allocation1] ss:$4 sm:$0xff] %v716_v3 }
  0x6e   : > { %v348_v15 = vld.sshfl [vmem:[#allocation1] sm:$0xff pattern:$0x73625140] }
  0x6f   : > { %352 = vst [vmem:[#allocation1] ss:$4 sm:$0xff] %v708_v0 }
  0x76   : > { %v353_v16 = vld.sshfl [vmem:[#allocation1] sm:$0xff pattern:$0x73625140] }
  0x77   : > { %361 = vst [vmem:[#allocation1] ss:$4 sm:$0xff] %v711_v1 }
  0x7e   : > { %v362_v17 = vld.sshfl [vmem:[#allocation1] sm:$0xff pattern:$0x73625140] }
  0x7f   : > { %364 = vrot.lane.b32.xlu0 %v362_v17, %s659_s23  ;;  %375 = vst [vmem:[#allocation1] ss:$4 sm:$0xff] %v716_v3 }
  0x86   : > { %v376_v18 = vld.sshfl [vmem:[#allocation1] sm:$0xff pattern:$0x73625140] }
  0x87   : > { %385 = vst [vmem:[#allocation1] ss:$4 sm:$0xff] %v719_v5  ;;  %378 = vrot.lane.b32.xlu0 %v376_v18, %s661_s25 }
  0x8e   : > { %v386_v19 = vld.sshfl [vmem:[#allocation1] sm:$0xff pattern:$0x73625140] }
  0x8f   : > { %388 = vrot.lane.b32.xlu1 %v386_v19, %s662_s26  ;;  %393 = vst [vmem:[#allocation1] ss:$4 sm:$0xff] %v711_v1  ;;  %350 = vrot.lane.b32.xlu0 %v348_v15, %s663_s27 }
  0x91   : > { %v274_v20 = vpop.permute.xlu2 %273  ;;  %v239_v24 = vpop.permute.xlu1 %238 }
  0x92   : > { %v745_v21 = vsel %vm240_vm0, 0, %v274_v20  ;;  %v751_v25 = vsel %vm240_vm0, 0, %v239_v24  ;;  %vm495_vm0 = vcmask 293888  }
  0x96   : > { %v394_v22 = vld.sshfl [vmem:[#allocation1] sm:$0xff pattern:$0x73625140] }
  0x97   : > { %406 = vst [vmem:[#allocation1] ss:$4 sm:$0xff] %v716_v3  ;;  %278 = vrot.lane.b32.xlu0 %v745_v21, %s663_s27 }
  0x9e   : > { %v407_v23 = vld.sshfl [vmem:[#allocation1] sm:$0xff pattern:$0x73625140] }
  0x9f   : > { %409 = vrot.lane.b32.xlu2 %v407_v23, %s662_s26  ;;  %413 = vst [vmem:[#allocation1] ss:$4 sm:$0xff] %v708_v0  ;;  %255 = vrot.lane.b32.xlu0 %v751_v25, %s663_s27 }
  0xa6   : > { %v414_v26 = vld.sshfl [vmem:[#allocation1] sm:$0xff pattern:$0x73625140] }
  0xa7   : > { %416 = vrot.lane.b32.xlu2 %v414_v26, %s663_s27  ;;  %425 = vst [vmem:[#allocation1] ss:$4 sm:$0xff] %v719_v5 }
  0xae   : > { %v426_v29 = vld.sshfl [vmem:[#allocation1] sm:$0xff pattern:$0x73625140] }
  0xaf   : > { %428 = vrot.lane.b32.xlu1 %v426_v29, %s664_s28  ;;  %247 = vrot.lane.b32.xlu2 %v245_v6, %s660_s24 }
  0xb1   : > { %v327_v38 = vpop.permute.xlu2 %326 }
  0xb2   : > { %v329_v58 = vsel %vm249_vm8, 0, %v327_v38 }
  0xb3   : > { %v802_v62 = vsel %vm793_vm9, %v329_v58, 0 }
  0xb7   : > { %396 = vrot.lane.b32.xlu1 %v394_v22, %s663_s27 }
  0xb9   : > { %v293_v32 = vpop.permute.xlu0 %292 }
  0xba   : > { %v296_v33 = vsel %vm294_vm2, 0, %v293_v32 }
  0xbb   : > { %v302_v34 = vsel %vm759_vm3, %v296_v33, 0 }
  0xbc   : > { %314 = vrot.lane.b32.xlu2 %v302_v34, %s663_s27 }
  0xbf   : > { %355 = vrot.lane.b32.xlu1 %v353_v16, %s663_s27  ;;  %v666_v16 = vmov 0  }
  0xc0   : > { %646 = vset.pattern.permute.xlu1 %v666_v16  ;;  %647 = vset.pattern.permute.xlu2 %v666_v16 }
  0xc1   : > { %v307_v35 = vpop.permute.xlu0 %306  ;;  %648 = vset.pattern.permute.xlu0 %v666_v16 }
  0xc2   : > { %v310_v36 = vsel %vm308_vm4, %v307_v35, 0 }
  0xc3   : > { %v312_v37 = vsel %vm759_vm3, %v310_v36, 0 }
  0xc7   : > { %222 = vrot.lane.b32.xlu1 %v713_v2, %s665_s29 }
  0xcf   : > { %283 = vrot.lane.b32.xlu1 %v726_v9, %s663_s27 }
  0xd7   : > { %317 = vrot.lane.b32.xlu1 %v312_v37, %s663_s27 }
  0xdf   : > { %261 = vrot.lane.b32.xlu1 %v722_v7, %s663_s27 }
  0xe7   : > { %532 = vperm.xlu1 %646, %v529_v11  }
  0xf1   : > { %v365_v39 = vpop.permute.xlu0 %364 }
  0xf2   : > { %v367_v40 = vsel %vm308_vm4, %v365_v39, 0 }
  0xf3   : > { %v369_v41 = vsel %vm759_vm3, %v367_v40, 0 }
  0xf4   : > { %371 = vrot.lane.b32.xlu2 %v369_v41, %s663_s27 }
  0xf9   : > { %v410_v42 = vpop.permute.xlu2 %409  ;;  %v379_v54 = vpop.permute.xlu0 %378 }
  0xfa   : > { %v778_v43 = vsel %vm390_vm5, %v410_v42, 0  ;;  %v382_v19 = vsel %vm380_vm14, %v379_v54, 0 }
  0xfb   : > { %419 = vrot.lane.b32.xlu0 %v778_v43, %s663_s27  ;;  %v384_v24 = vsel %vm793_vm9, %v382_v19, 0 }
 0x101   : > { %v389_v44 = vpop.permute.xlu1 %388  ;;  %v417_v51 = vpop.permute.xlu2 %416 }
 0x102   : > { %v782_v45 = vsel %vm390_vm5, %v389_v44, 0  ;;  %v351_v60 = vpop.permute.xlu0 %350  ;;  %v422_v6 = vsel %vm263_vm10, %v711_v1, %v417_v51 }
 0x103   : > { %399 = vrot.lane.b32.xlu2 %v782_v45, %s663_s27  ;;  %v358_v63 = vsel %vm263_vm10, %v719_v5, %v351_v60 }
 0x109   : > { %v248_v53 = vpop.permute.xlu2 %247 }
 0x10a   : > { %v279_v18 = vpop.permute.xlu0 %278  ;;  %v251_v20 = vsel %vm249_vm8, 0, %v248_v53 }
 0x10b   : > { %335 = vrot.lane.b32.xlu2 %v733_v13, %s663_s27  ;;  %v461_v13 = vrot.slane %v422_v6, 2  ;;  %v253_v26 = vsel %vm793_vm9, %v251_v20, 0  ;;  %v286_v35 = vsel %vm263_vm10, %v751_v25, %v279_v18 }
 0x10c   : > { %v442_v39 = vrot.slane %v286_v35, 6 }
 0x112   : > { %v256_v33 = vpop.permute.xlu0 %255 }
 0x113   : > { %540 = vperm.xlu2 %647, %v537_v12  }
 0x116   : > { %v315_v56 = vpop.permute.xlu2 %314 }
 0x117   : > { %v320_v40 = vsel %vm263_vm10, %v745_v21, %v315_v56 }
 0x121   : > { %v429_v46 = vpop.permute.xlu1 %428 }
 0x122   : > { %v432_v47 = vsel %vm430_vm6, %v429_v46, 0  ;;  %v446_v46 = vrot.slane %v320_v40, 4 }
 0x123   : > { %v434_v48 = vsel %vm759_vm3, %v432_v47, 0 }
 0x124   : > { %436 = vrot.lane.b32.xlu0 %v434_v48, %s663_s27 }
 0x129   : > { %v397_v49 = vpop.permute.xlu1 %396 }
 0x12a   : > { %v402_v4 = vsel %vm263_vm10, %v802_v62, %v397_v49 }
 0x12b   : > { %v457_v9 = vrot.slane %v402_v4, 4 }
 0x12c   : > { %340 = vrot.lane.b32.xlu0 %v736_v14, %s663_s27 }
 0x131   : > { %v356_v50 = vpop.permute.xlu1 %355 }
 0x139   : > { %v223_v52 = vpop.permute.xlu1 %222 }
 0x13a   : > { %v227_v27 = vsel %vm224_vm15, 0, %v223_v52 }
 0x13b   : > { %v233_v32 = vsel %vm793_vm9, %v227_v27, 0 }
 0x13c   : > { %v266_v38 = vsel %vm263_vm10, %v233_v32, %v256_v33 }
 0x13d   : > { %v465_v42 = vsel %vm463_vm11, %v266_v38, %v442_v39 }
 0x13e   : > { %v470_v25 = vsel %vm468_vm12, %v465_v42, %v446_v46 }
 0x141   : > { %v284_v55 = vpop.permute.xlu1 %283 }
 0x142   : > { %v288_v22 = vsel %vm263_vm10, %v719_v5, %v284_v55 }
 0x143   : > { %v443_v28 = vrot.slane %v288_v22, 6 }
 0x149   : > { %v318_v59 = vpop.permute.xlu1 %317 }
 0x14a   : > { %v322_v61 = vsel %vm263_vm10, %v716_v3, %v318_v59  ;;  %v360_v3 = vsel %vm263_vm10, %v711_v1, %v356_v50  ;;  %v494_v50 = vld [vmem:[%s874_s1] sm:$0xf] }
 0x14b   : > { %v453_v2 = vrot.slane %v322_v61, 6  ;;  %v447_v34 = vrot.slane %v322_v61, 4 }
 0x14d   : > { %v481_v8 = vsel %vm463_vm11, %v358_v63, %v453_v2 }
 0x14e   : > { %v372_v7 = vpop.permute.xlu2 %371 }
 0x14f   : > { %v374_v10 = vsel %vm263_vm10, %v708_v0, %v372_v7  ;;  %v485_v0 = vsel %vm468_vm12, %v481_v8, %v457_v9 }
 0x150   : > { %v454_v14 = vrot.slane %v374_v10, 6  ;;  %v499_v15 = vsel %vm463_vm11, %v374_v10, 0  ;;  %v489_v17 = vsel %vm473_vm13, %v485_v0, %v461_v13 }
 0x151   : > { %508 = vmatpush.bf16.msra.mxu0 %v499_v15  ;;  %v262_v23 = vpop.permute.xlu1 %261 }
 0x152   : > { %v483_v1 = vsel %vm463_vm11, %v360_v3, %v454_v14  ;;  %v269_v30 = vsel %vm263_vm10, %v253_v26, %v262_v23 }
 0x153   : > { %v467_v36 = vsel %vm463_vm11, %v269_v30, %v443_v28 }
 0x154   : > { %v472_v41 = vsel %vm468_vm12, %v467_v36, %v447_v34 }
 0x155   : > { %509 = vmatpush.bf16.msra.mxu0 %v489_v17 }
 0x15d   : > { %v400_v29 = vpop.permute.xlu2 %399 }
 0x15e   : > { %v405_v31 = vsel %vm263_vm10, %v384_v24, %v400_v29 }
 0x15f   : > { %v458_v5 = vrot.slane %v405_v31, 4 }
 0x161   : > { %v487_v37 = vsel %vm468_vm12, %v483_v1, %v458_v5 }
 0x165   : > { %v336_v44 = vpop.permute.xlu2 %335 }
 0x166   : > { %v343_v47 = vsel %vm263_vm10, %v253_v26, %v336_v44 }
 0x167   : > { %v450_v48 = vrot.slane %v343_v47, 2 }
 0x169   : > { %v475_v49 = vsel %vm473_vm13, %v470_v25, %v450_v48 }
 0x16a   : > { %510 = vmatpush.bf16.msra.mxu0 %v475_v49 }
 0x16d   : > { %623 = vmatmul.msk.bf16.vlgmr.msra.gmra.mxu0 %vm495_vm0, %v494_v50  ;;  %v420_v21 = vpop.permute.xlu0 %419 }
 0x16e   : > { %v424_v51 = vsel %vm263_vm10, %v782_v45, %v420_v21  ;;  %v533_v45 = vpop.permute.xlu1 %532 }
 0x16f   : > { %v462_v54 = vrot.slane %v424_v51, 2 }
 0x171   : > { %v492_v56 = vsel %vm473_vm13, %v487_v37, %v462_v54 }
 0x196   : > { %v437_v52 = vpop.permute.xlu0 %436 }
 0x197   : > { %v439_v53 = vsel %vm263_vm10, %v778_v43, %v437_v52  ;;  %v541_v43 = vpop.permute.xlu2 %540 }
 0x198   : > { %v501_v55 = vsel %vm463_vm11, %v439_v53, 0 }
 0x199   : > { %521 = vmatpush.bf16.msra.mxu1 %v501_v55 }
 0x19d   : > { %522 = vmatpush.bf16.msra.mxu1 %v492_v56 }
 0x19e   : > { %v341_v57 = vpop.permute.xlu0 %340 }
 0x19f   : > { %v346_v58 = vsel %vm263_vm10, %v802_v62, %v341_v57 }
 0x1a0   : > { %v451_v59 = vrot.slane %v346_v58, 2 }
 0x1a2   : > { %v478_v60 = vsel %vm473_vm13, %v472_v41, %v451_v59 }
 0x1a3   : > { %523 = vmatpush.bf16.msra.mxu1 %v478_v60 }
 0x1a6   : > { %624 = vmatmul.msk.bf16.vlgmr.msra.gmra.mxu1 %vm495_vm0, %v494_v50 }
 0x1ea   : > { %v512_v61 = vpop.f32.mrf.mxu0 }
 0x1eb   : > { %v535_v63 = vmul.f32 %v533_v45, %v512_v61 }
 0x1ed   : > { %v543_v2 = vadd.f32 %v541_v43, %v535_v63 }
 0x1ef   : > { %v545_v4 = vmax.f32 %v543_v2, 0.0 }
 0x1f1   : > { %548 = vrot.lane.b32.xlu0 %v545_v4, %s663_s27 }
 0x1f2   : > { %v514_v6 = vpop.f32.mrf.mxu0 }
 0x223   : > { %v525_v7 = vpop.f32.mrf.mxu1 }
 0x224   : > { %v536_v8 = vmul.f32 %v533_v45, %v525_v7 }
 0x226   : > { %v544_v9 = vadd.f32 %v541_v43, %v536_v8 }
 0x228   : > { %v546_v62 = vmax.f32 %v544_v9, 0.0 }
 0x22a   : > { %553 = vrot.lane.b32.xlu1 %v546_v62, %s663_s27 }
 0x22b   : > { %v527_v3 = vpop.f32.mrf.mxu1 }
 0x263   : > { %v549_v10 = vpop.permute.xlu0 %548 }
 0x264   : > { %v551_v12 = vmax.f32 %v545_v4, %v549_v10 }
 0x29c   : > { %v554_v11 = vpop.permute.xlu1 %553 }
 0x29d   : > { %v556_v13 = vmax.f32 %v546_v62, %v554_v11 }
 0x29f   : > { %v557_v14 = vmax.f32 %v551_v12, %v556_v13 }
 0x2a1   : > { %558 = vst.msk [vmem:[%s195_s12] sm:$0xff] %vm263_vm10, %v557_v14 }
 0x2a2 PF: > { %s14_s15 = sadd.s32 1, %s655_s15  }
 0x2a3   : > { %p11_p4 = scmp.ge.s32.totalorder %s14_s15, 4  }
 0x2a5   :  { %13 = sbr.rel (!%p11_p4) target bundleno = 1 (0x1), region = 69 }

</bundles_post_ra>
